<compile_context>
chip_gen: v7x
topology: tpu7x:2x2x1
jax: 0.10.0
libtpu: 0.0.40
codegen_flags: <defaults>
</compile_context>

<pallas_src>
import functools

import jax
import jax.numpy as jnp
from jax import lax
from jax.experimental import pallas as pl
from jax.experimental.pallas import tpu as pltpu

_LANES = 128


def _round_up(a, m):
    return -(-a // m) * m


def _l_color_kernel(x_ref, o_ref, acc_ref, *, inv_n, n_valid, spatial_block,
                    mask_tail):
    """Accumulates per-channel spatial sums; epilogue computes the color loss.

    x_ref:   (TB, C, TN)       flat-spatial tile (ragged H*W path), or
             (TB, C, TR, 128)  lane-dense tile   (H*W % 128 == 0 path)
    o_ref:   (TB, 1, 1, 1)     per-image loss, written on the last spatial step
    acc_ref: (TB, C) f32       running per-channel sums (persists across the
                               spatial grid axis)
    """
    j = pl.program_id(1)
    last = pl.num_programs(1) - 1

    @pl.when(j == 0)
    def _init():
        acc_ref[...] = jnp.zeros_like(acc_ref)

    x = x_ref[...].astype(jnp.float32)

    def tile_sum(v):
        # Reduce lanes first, then sublanes (single-axis reduces only).
        s = v
        for ax in range(v.ndim - 1, 1, -1):
            s = jnp.sum(s, axis=ax)
        return s  # (TB, C)

    if mask_tail:
        # Only the last spatial tile overruns the true pixel count; keep the
        # steady-state step free of the iota/compare/select.
        @pl.when(j != last)
        def _acc_body():
            acc_ref[...] += tile_sum(x)

        @pl.when(j == last)
        def _acc_tail():
            if x.ndim == 3:
                pos = j * spatial_block + lax.broadcasted_iota(
                    jnp.int32, x.shape, 2)
            else:
                row = lax.broadcasted_iota(jnp.int32, x.shape, 2)
                lane = lax.broadcasted_iota(jnp.int32, x.shape, 3)
                pos = (j * spatial_block + row) * x.shape[3] + lane
            acc_ref[...] += tile_sum(jnp.where(pos < n_valid, x, 0.0))
    else:
        acc_ref[...] += tile_sum(x)

    @pl.when(j == last)
    def _finalize():
        mean = acc_ref[...] * inv_n          # (TB, C) spatial channel means
        mr = mean[:, 0:1]
        mg = mean[:, 1:2]
        mb = mean[:, 2:3]
        drg = (mr - mg) ** 2
        drb = (mr - mb) ** 2
        dgb = (mb - mg) ** 2
        k = jnp.sqrt(drg * drg + drb * drb + dgb * dgb)      # (TB, 1)
        o_ref[...] = k.reshape(k.shape[0], 1, 1, 1).astype(o_ref.dtype)


def _vmem_capacity_bytes():
    try:
        info = pltpu.get_tpu_info()
        cap = getattr(info, "vmem_capacity_bytes", None)
        if cap:
            return int(cap)
    except Exception:
        pass
    return 64 << 20  # conservative fallback (v7x-sized VMEM)


def l_color(x, *, block_vmem_bytes=None):
    """Pallas TPU implementation of L_color.forward.

    x: (b, c, h, w) with c >= 3 (channels beyond RGB are streamed but ignored,
       matching the reference which only uses the R, G, B means).
    Returns (b, 1, 1, 1) float32.

    block_vmem_bytes optionally overrides the per-pipeline-buffer VMEM budget
    (mainly for tests); by default it is derived from the chip's VMEM capacity.
    """
    b, c, h, w = x.shape
    assert c >= 3, "L_color needs at least 3 (RGB) channels"
    n = h * w
    itemsize = jnp.dtype(x.dtype).itemsize
    native_sub = max(8, 32 // max(itemsize, 1))   # 8 f32 / 16 bf16 / 32 int8

    cap = _vmem_capacity_bytes()
    if block_vmem_bytes is None:
        if cap >= (100 << 20):                  # v5e / v6e class (128 MiB VMEM)
            usable = 40 << 20
        else:                                   # v7x class (64 MiB) or unknown
            usable = max(24 << 20, cap - (16 << 20))
        block_vmem_bytes = max(2 << 20, (usable - (4 << 20)) // 2)
    blk_budget = int(block_vmem_bytes)

    dense = (n % _LANES == 0)
    mask_tail = False

    if dense:
        # Free reshape to a fully lane-packed slab: VMEM bytes == HBM bytes.
        rows = n // _LANES
        img_vmem = c * _round_up(rows, native_sub) * _LANES * itemsize
        if img_vmem <= blk_budget:
            tb = max(1, min(b, blk_budget // img_vmem))
            if b >= 2:
                tb = min(tb, -(-b // 2))   # keep >= 2 batch steps (v7x megacore)
            tr = rows
            spatial_steps = 1
        else:
            tb = 1
            tr = max(native_sub,
                     (blk_budget // (c * _LANES * itemsize))
                     // native_sub * native_sub)
            if tr >= rows:
                tr = rows
            spatial_steps = -(-rows // tr)
            mask_tail = (rows % tr) != 0
        x_in = x.reshape(b, c, rows, _LANES)
        in_spec = pl.BlockSpec((tb, c, tr, _LANES), lambda i, j: (i, 0, j, 0))
        blk_vmem = tb * c * _round_up(tr, native_sub) * _LANES * itemsize
        spatial_block = tr
    else:
        # Ragged H*W: keep the flat (b, c, n) layout (free reshape, no pad
        # copy). c rides the sublane axis (padded to the native tile in VMEM,
        # accounted for below); the ragged tail is masked in-kernel.
        padded_c = _round_up(c, native_sub)
        n_lanes = _round_up(n, _LANES)
        img_vmem = padded_c * n_lanes * itemsize
        if img_vmem <= blk_budget:
            tb = max(1, min(b, blk_budget // img_vmem))
            if b >= 2:
                tb = min(tb, -(-b // 2))
            tn = n                         # full-extent spatial block: no mask
            spatial_steps = 1
        else:
            tb = 1
            tn = max(_LANES,
                     (blk_budget // (padded_c * itemsize)) // _LANES * _LANES)
            if tn >= n:
                tn = n
            spatial_steps = -(-n // tn)
            mask_tail = (n % tn) != 0
        x_in = x.reshape(b, c, n)
        in_spec = pl.BlockSpec((tb, c, tn), lambda i, j: (i, 0, j))
        blk_vmem = tb * padded_c * _round_up(tn, _LANES) * itemsize
        spatial_block = tn

    bsteps = -(-b // tb)                   # cdiv: partial last batch block OK
    grid = (bsteps, spatial_steps)

    vmem_limit = 2 * blk_vmem + (8 << 20)
    vmem_limit = max(vmem_limit, 16 << 20)
    vmem_limit = min(vmem_limit, max(cap - (8 << 20), 16 << 20))

    kernel = functools.partial(
        _l_color_kernel,
        inv_n=1.0 / float(n),
        n_valid=n,
        spatial_block=spatial_block,
        mask_tail=mask_tail,
    )

    return pl.pallas_call(
        kernel,
        out_shape=jax.ShapeDtypeStruct((b, 1, 1, 1), jnp.float32),
        grid=grid,
        in_specs=[in_spec],
        out_specs=pl.BlockSpec((tb, 1, 1, 1), lambda i, j: (i, 0, 0, 0)),
        scratch_shapes=[pltpu.VMEM((tb, c), jnp.float32)],
        compiler_params=pltpu.CompilerParams(
            dimension_semantics=("parallel", "arbitrary"),
            vmem_limit_bytes=int(vmem_limit),
        ),
    )(x_in)


def _l_color_ref(x):
    """Pure-JAX reference mirroring the PyTorch module."""
    mean_rgb = jnp.mean(x.astype(jnp.float32), axis=(2, 3), keepdims=True)
    mr = mean_rgb[:, 0:1]
    mg = mean_rgb[:, 1:2]
    mb = mean_rgb[:, 2:3]
    drg = (mr - mg) ** 2
    drb = (mr - mb) ** 2
    dgb = (mb - mg) ** 2
    return jnp.sqrt(drg ** 2 + drb ** 2 + dgb ** 2)


if __name__ == "__main__":
    keys = jax.random.split(jax.random.PRNGKey(0), 8)

    def check(out, ref):
        assert out.shape == ref.shape, (out.shape, ref.shape)
        assert jnp.allclose(out, ref, atol=1e-6, rtol=1e-4), (out, ref)

    # 1) Small RGB batch, H*W % 128 == 0 -> dense lane-packed path; one image
    #    per step so the batch axis has >= 2 parallel steps (v7x megacore).
    x1 = jax.random.uniform(keys[0], (2, 3, 16, 16), dtype=jnp.float32)
    check(jax.block_until_ready(l_color(x1)), _l_color_ref(x1))

    # 2) Ragged spatial size (23*37 = 851 px): flat no-pad path, 2 images/step
    #    with a partial last batch block (b=3 not divisible by tb=2).
    x2 = jax.random.uniform(keys[1], (3, 3, 23, 37), dtype=jnp.float32)
    check(jax.block_until_ready(l_color(x2)), _l_color_ref(x2))

    # 3) Force the spatially tiled multi-step accumulation path (dense slab).
    x3 = jax.random.uniform(keys[2], (2, 3, 64, 64), dtype=jnp.float32)
    check(jax.block_until_ready(l_color(x3, block_vmem_bytes=8 * 1024)),
          _l_color_ref(x3))

    # 4) Force the tiled + masked-tail path (ragged spatial, multi-step).
    x4 = jax.random.uniform(keys[3], (1, 3, 50, 61), dtype=jnp.float32)
    check(jax.block_until_ready(l_color(x4, block_vmem_bytes=8 * 1024)),
          _l_color_ref(x4))

    # 5) Extra channels beyond RGB are streamed but ignored.
    x5 = jax.random.uniform(keys[4], (2, 4, 16, 16), dtype=jnp.float32)
    check(jax.block_until_ready(l_color(x5)), _l_color_ref(x5))

    print("KERNEL_OK")
</pallas_src>

<mosaic_0001>
module attributes {stable_mosaic.version = 11 : i64} {
  func.func @_l_color_kernel(%arg0: i32, %arg1: i32, %arg2: memref<1x3x2x128xf32, #tpu.memory_space<vmem>>, %arg3: memref<1x1x1x1xf32, #tpu.memory_space<vmem>>, %arg4: memref<1x3xf32, #tpu.memory_space<vmem>>) attributes {dimension_semantics = [#tpu.dimension_semantics<parallel>, #tpu.dimension_semantics<arbitrary>], iteration_bounds = array<i64: 2, 1>, scalar_prefetch = 0 : i64, scratch_operands = 1 : i64, tpu.core_type = #tpu.core_type<tc>, window_params = [{transform_indices = @transform_0, window_bounds = array<i64: 1, 3, 2, 128>}, {transform_indices = @transform_1, window_bounds = array<i64: 1, 1, 1, 1>}]} {
    %c0_i32 = arith.constant 0 : i32
    %0 = arith.cmpi eq, %arg1, %c0_i32 : i32
    %1 = arith.extui %0 : i1 to i32
    %c0_i32_0 = arith.constant 0 : i32
    %2 = arith.cmpi ne, %1, %c0_i32_0 : i32
    scf.if %2 {
      %cst_11 = arith.constant 0.000000e+00 : f32
      %12 = vector.broadcast %cst_11 : f32 to vector<1x3xf32>
      %c0_12 = arith.constant 0 : index
      %c0_13 = arith.constant 0 : index
      %13 = vector.load %arg4[%c0_12, %c0_13] : memref<1x3xf32, #tpu.memory_space<vmem>>, vector<1x3xf32>
      tpu.vector_store %arg4[%c0_12, %c0_13], %12 {strides = array<i32>} : memref<1x3xf32, #tpu.memory_space<vmem>>, vector<1x3xf32>,
    } else {
    }
    %c0 = arith.constant 0 : index
    %c0_1 = arith.constant 0 : index
    %c0_2 = arith.constant 0 : index
    %c0_3 = arith.constant 0 : index
    %3 = vector.load %arg2[%c0, %c0_1, %c0_2, %c0_3] : memref<1x3x2x128xf32, #tpu.memory_space<vmem>>, vector<1x3x2x128xf32>
    %c0_4 = arith.constant 0 : index
    %c0_5 = arith.constant 0 : index
    %4 = vector.load %arg4[%c0_4, %c0_5] : memref<1x3xf32, #tpu.memory_space<vmem>>, vector<1x3xf32>
    %cst = arith.constant dense<0.000000e+00> : vector<1x3x2xf32>
    %5 = vector.multi_reduction <add>, %3, %cst [3] : vector<1x3x2x128xf32> to vector<1x3x2xf32>
    %cst_6 = arith.constant dense<0.000000e+00> : vector<1x3xf32>
    %6 = vector.multi_reduction <add>, %5, %cst_6 [2] : vector<1x3x2xf32> to vector<1x3xf32>
    %7 = arith.addf %4, %6 : vector<1x3xf32>
    %c0_7 = arith.constant 0 : index
    %c0_8 = arith.constant 0 : index
    %8 = vector.load %arg4[%c0_7, %c0_8] : memref<1x3xf32, #tpu.memory_space<vmem>>, vector<1x3xf32>
    tpu.vector_store %arg4[%c0_7, %c0_8], %7 {strides = array<i32>} : memref<1x3xf32, #tpu.memory_space<vmem>>, vector<1x3xf32>,
    %c0_i32_9 = arith.constant 0 : i32
    %9 = arith.cmpi eq, %arg1, %c0_i32_9 : i32
    %10 = arith.extui %9 : i1 to i32
    %c0_i32_10 = arith.constant 0 : i32
    %11 = arith.cmpi ne, %10, %c0_i32_10 : i32
    scf.if %11 {
      %c0_11 = arith.constant 0 : index
      %c0_12 = arith.constant 0 : index
      %12 = vector.load %arg4[%c0_11, %c0_12] : memref<1x3xf32, #tpu.memory_space<vmem>>, vector<1x3xf32>
      %cst_13 = arith.constant 3.906250e-03 : f32
      %13 = vector.broadcast %cst_13 : f32 to vector<1x3xf32>
      %14 = arith.mulf %12, %13 : vector<1x3xf32>
      %15 = vector.extract_strided_slice %14 {offsets = [0, 0], sizes = [1, 1], strides = [1, 1]} : vector<1x3xf32> to vector<1x1xf32>
      %16 = vector.extract_strided_slice %14 {offsets = [0, 1], sizes = [1, 1], strides = [1, 1]} : vector<1x3xf32> to vector<1x1xf32>
      %17 = vector.extract_strided_slice %14 {offsets = [0, 2], sizes = [1, 1], strides = [1, 1]} : vector<1x3xf32> to vector<1x1xf32>
      %18 = arith.subf %15, %16 : vector<1x1xf32>
      %19 = arith.mulf %18, %18 : vector<1x1xf32>
      %20 = arith.subf %15, %17 : vector<1x1xf32>
      %21 = arith.mulf %20, %20 : vector<1x1xf32>
      %22 = arith.subf %17, %16 : vector<1x1xf32>
      %23 = arith.mulf %22, %22 : vector<1x1xf32>
      %24 = arith.mulf %19, %19 : vector<1x1xf32>
      %25 = arith.mulf %21, %21 : vector<1x1xf32>
      %26 = arith.addf %24, %25 : vector<1x1xf32>
      %27 = arith.mulf %23, %23 : vector<1x1xf32>
      %28 = arith.addf %26, %27 : vector<1x1xf32>
      %29 = math.sqrt %28 : vector<1x1xf32>
      %30 = vector.shape_cast %29 : vector<1x1xf32> to vector<1x1x1x1xf32>
      %c0_14 = arith.constant 0 : index
      %c0_15 = arith.constant 0 : index
      %c0_16 = arith.constant 0 : index
      %c0_17 = arith.constant 0 : index
      %31 = vector.load %arg3[%c0_14, %c0_15, %c0_16, %c0_17] : memref<1x1x1x1xf32, #tpu.memory_space<vmem>>, vector<1x1x1x1xf32>
      tpu.vector_store %arg3[%c0_14, %c0_15, %c0_16, %c0_17], %30 {strides = array<i32>} : memref<1x1x1x1xf32, #tpu.memory_space<vmem>>, vector<1x1x1x1xf32>,
    } else {
    }
    return
  }
  func.func @transform_0(%arg0: i32, %arg1: i32) -> (i32, i32, i32, i32) {
    %c0_i32 = arith.constant 0 : i32
    %c0_i32_0 = arith.constant 0 : i32
    %c0_i32_1 = arith.constant 0 : i32
    return %arg0, %c0_i32, %arg1, %c0_i32_0 : i32, i32, i32, i32
  }
  func.func @transform_1(%arg0: i32, %arg1: i32) -> (i32, i32, i32, i32) {
    %c0_i32 = arith.constant 0 : i32
    %c0_i32_0 = arith.constant 0 : i32
    %c0_i32_1 = arith.constant 0 : i32
    %c0_i32_2 = arith.constant 0 : i32
    return %arg0, %c0_i32, %c0_i32_0, %c0_i32_1 : i32, i32, i32, i32
  }
}

</mosaic_0001>

<bundles_post_ra>
// kernel: tpu_custom_call.1
= control target key start
LH: loop header
LB: loop body
LE: loop exit
PB: predicated region body
PF: predicated region fallthrough
CT: control target
= control target key end

     0   :  { %6 = vsyncpa [#allocation4], 0  ;;  %s661_s0 = inlined_call_operand.hbm [shape: f32[2,3,2,128], index: 0, kind: input, shape index: {}]   ;;  %s662_s1 = inlined_call_operand.vmem [shape: f32[2,1,1,1], index: 1, kind: output, shape index: {}]  }
   0x1   :  { %8 = vsyncpa [#allocation4 + $0x1], 0  ;;  %s541_s6 = smov 0   ;;  %s543_s7 = smov 0  }
   0x2   :  { %s545_s8 = smov 0   ;;  %s547_s9 = smov 0  }
   0x3   :  { %s549_s10 = smov 0   ;;  %s551_s11 = smov 0  }
   0x4 LB: > { %s363_s12 = sadd.s32 4294967295, %s520_s11   ;;  %s26_s13 = sadd.s32 1, %s516_s10  ;;  %s520_s11 = sphi %s551_s11, %s14_s11   ;;  %s516_s10 = sphi %s549_s10, %s669_s10   ;;  %s512_s9 = sphi %s547_s9, %s668_s9   ;;  %s508_s8 = sphi %s545_s8, %s667_s8   ;;  %s504_s7 = sphi %s543_s7, %s666_s7   ;;  %s500_s6 = sphi %s541_s6, %s665_s6  }
   0x5   : > { %p28_p0 = scmp.ge.s32.totalorder %s26_s13, 2  ;;  %s35_s14 = sadd.s32 1, %s508_s8 }
   0x6   : > { %p42_p1 = scmp.ne.s32.totalorder %s508_s8, %s504_s7  ;;  %p43_p2 = scmp.eq.s32.totalorder %s520_s11, 0 }
   0x7   : > { %s671_s13 = smov (%p28_p0, %s26_s13), 0  ;;  %p48_p4 = scmp.ne.s32.totalorder %s504_s7, %s500_s6 }
   0x8   : > { %p44_p3 = por %p43_p2, %p42_p1  ;;  %s30_s15 = ssub.s32 %s516_s10, %s671_s13 }
   0x9   : > { %p49_p5 = scmp.eq.s32.totalorder %s363_s12, 0  ;;  %p33_p6 = scmp.eq.s32.totalorder %s30_s15, 0 }
   0xa   : > { %p380_p8 = scmp.lt.s32.totalorder %s520_s11, 2  ;;  %s98_s18 = sand.u32 1, %s508_s8  }
   0xb   : > { %p580_p7 = por %p49_p5, %p48_p4  ;;  %s372_s19 = smul.u32 96, %s516_s10 }
   0xc   : > { %s586_s17 = scalar_select %p33_p6, %s508_s8, %s35_s14  }
   0xd   : > { %s371_s20 = smul.u32 6, %s98_s18  ;;  %s593_s23 = scalar_lea.hbm %s661_s0, %s372_s19 }
   0xe   : > { %p595_p9 = pnand %p380_p8, %p44_p3  ;;  %s601_s27 = scalar_lea.sflag [#allocation4], %s98_s18 }
   0xf   : > { %s102_s25 = scalar_lea.vmem [#allocation3], %s371_s20  ;;  %s440_s28 = scalar_lea.hbm %s593_s23, 96 }
  0x10   : > { %s110_s26 = sshll.u32 %s102_s25, 4  ;;  %p441_p10 = scmp.ne.s32.totalorder %s593_s23, %s440_s28  ;;  %s599_s26 = int_to_ptr.vmem [resolvable:$true] %s110_s26 }
  0x11   : > { %p442_p11 = pneg %p595_p9  ;;  %s445_s2 = scalar_lea.hbm %s661_s0, 192 }
  0x12   : > { %p446_p0 = scmp.lt.u32.totalorder %s593_s23, %s661_s0  ;;  %p447_p1 = scmp.lt.u32.totalorder %s445_s2, %s440_s28 }
  0x13   : > { %p443_p12 = pnand %p442_p11, %p441_p10  ;;  %p449_p3 = scmp.lt.u32.totalorder %s440_s28, %s593_s23 }
  0x14   : > { %p448_p2 = por %p447_p1, %p446_p0 }
  0x15   : > { %p444_p13 = pneg %p443_p12 }
  0x16   : > { %p450_p4 = por %p449_p3, %p448_p2 }
  0x18   : > { %p451_p5 = pnand %p450_p4, %p444_p13 }
  0x1a   : > { %454 = shalt.err (!%p451_p5)
}
  0x1b   : > { %s455_s5 = scalar_lea.vmem %s599_s26, 96  ;;  %s522_s6 = smov [#allocation3]  }
  0x1c   : > { %p456_p6 = scmp.ne.s32.totalorder %s599_s26, %s455_s5  ;;  %s460_s12 = sshll.u32 %s522_s6, 4  ;;  %s461_s12 = int_to_ptr.vmem [resolvable:$false] %s460_s12 }
  0x1d   : > { %s462_s14 = scalar_lea.vmem %s461_s12, 192  ;;  %p463_p12 = scmp.lt.s32.totalorder %s599_s26, %s461_s12 }
  0x1e   : > { %p458_p8 = pnand %p456_p6, %p442_p11  ;;  %p464_p0 = scmp.lt.s32.totalorder %s462_s14, %s455_s5 }
  0x20   : > { %p459_p10 = pneg %p458_p8  ;;  %p465_p1 = por %p464_p0, %p463_p12 }
  0x22   : > { %p466_p2 = pnand %p465_p1, %p459_p10 }
  0x24   : > { %469 = shalt.err (!%p466_p2)
}
  0x25   : > { %s523_s15 = smov 32   ;;  %s524_s18 = smov 2  }
  0x26   : > { %379 = dma.hbm_to_vmem [thread:$0]  (!%p595_p9), %s593_s23, 96, %s599_s26, %s601_s27, %s523_s15, %s523_s15, %s524_s18  }
  0x27   : > { %p368_p11 = scmp.ge.s32.totalorder %s520_s11, 1  ;;  %p118_p13 = scmp.lt.s32.totalorder %s520_s11, 3 }
  0x29   : > { %p119_p3 = pnand %p368_p11, %p118_p13 }
  0x2a   : > { %s124_s19 = sand.u32 (!%p119_p3), 1, %s504_s7  }
  0x2b   : > { %122 = sbr.rel (%p119_p3) target bundleno = 757 (0x2f5), region = 24  ;;  %s125_s21 = scalar_lea.sflag (!%p119_p3), [#allocation4], %s124_s19 }
  0x2c   : > { %s373_s20 = smul.u32 (!%p119_p3), 6, %s124_s19 }
  0x2e   : > { %s128_s22 = scalar_lea.vmem (!%p119_p3), [#allocation3], %s373_s20 }
  0x32   : > { %495 = dma.done.wait (%p580_p7), %s125_s21, 96  }
  0x33   : > { %497 = vsyncadd (%p580_p7), %s125_s21, 4294967200  ;;  %vm152_vm0 = vcmask 16384   ;;  %v525_v0 = vmov 0.0   ;;  %vm158_vm1 = vcmask 1041408   ;;  %v154_v1 = vld [vmem:[%s128_s22] sm:$0x3]  ;;  %v171_v7 = vlaneseq }
  0x34   : > { %153 = vst.msk [vmem:[#allocation2] sm:$0x1] %vm152_vm0, %v525_v0  ;;  %v155_v2 = vld [vmem:[%s128_s22 + $0x2] sm:$0x3]  ;;  %v156_v3 = vld [vmem:[%s128_s22 + $0x4] sm:$0x3] }
  0x35   : > { %v159_v4 = vsel %vm158_vm1, %v154_v1, 0.0  ;;  %v165_v5 = vsel %vm158_vm1, %v156_v3, 0.0  ;;  %v162_v6 = vsel %vm158_vm1, %v155_v2, 0.0  ;;  %v172_v8 = vand.u32 127, %v171_v7  ;;  %s528_s16 = smov 1   ;;  %s529_s23 = smov 127  }
  0x36   : > { %160 = vadd.xlane.f32.xlu0 %v159_v4  ;;  %166 = vadd.xlane.f32.xlu1 %v165_v5  ;;  %v174_v9 = vshrl.u32 %v171_v7, 7  ;;  %vm185_vm2 = vcmask 1041409   ;;  %vm187_vm3 = vcmask 1042434   ;;  %vm190_vm4 = vcmask 10240   ;;  %s530_s24 = smov 126   ;;  %p145_p7 = scmp.lt.s32.totalorder %s512_s9, 1 }
  0x37   : > { %v526_v20 = vmov 0   ;;  %v527_v21 = vmov 1966171168   ;;  %vm292_vm5 = vcmask 0  }
  0x38   : > { %v175_v11 = vsub.s32 %v172_v8, %v174_v9  ;;  %437 = vset.pattern.permute.xlu0 %v526_v20  ;;  %v209_v22 = vunpack.c.l.s4 %v527_v21  ;;  %v197_v23 = vsub.s32 0, %v174_v9  ;;  %v201_v24 = vsub.s32 1, %v174_v9  ;;  %s673_s9 = smov (!%p145_p7, %s512_s9), 1 }
  0x39   : > { %v205_v25 = vsub.s32 2, %v174_v9  ;;  %s147_s27 = scalar_lea.vmem %s662_s1, %s673_s9 }
  0x3a   : > { %163 = vadd.xlane.f32.xlu0 %v162_v6  ;;  %v210_v26 = vunpack.c.0.s8 %v209_v22 }
  0x3b   : > { %v157_v40 = vld [vmem:[#allocation2] sm:$0x1] }
  0x3c   : > { %v213_v28 = vsub.s32 %v210_v26, %v174_v9 }
  0xc3   : > { %v161_v10 = vpop.xlane.xlu0 %160  ;;  %v167_v12 = vpop.xlane.xlu1 %166 }
  0xc4   : > { %v184_v14 = vrot.slane %v167_v12, %v175_v11  ;;  %v176_v15 = vrot.slane %v161_v10, %v175_v11 }
  0xc7   : > { %v164_v13 = vpop.xlane.xlu0 %163 }
  0xc8   : > { %v180_v16 = vrot.slane %v164_v13, %v175_v11 }
  0xca   : > { %v186_v17 = vsel %vm185_vm2, %v180_v16, %v176_v15 }
  0xcb   : > { %v188_v18 = vsel %vm187_vm3, %v184_v14, %v186_v17 }
  0xcc   : > { %v191_v19 = vsel %vm190_vm4, %v188_v18, 0.0 }
  0xcd   : > { %192 = vadd.xlane.f32.xlu1 %v191_v19 }
 0x15a   : > { %v193_v27 = vpop.xlane.xlu1 %192 }
 0x15b   : > { %v198_v29 = vrot.slane %v193_v27, %v197_v23  ;;  %v202_v30 = vrot.slane %v193_v27, %v201_v24  ;;  %v206_v31 = vrot.slane %v193_v27, %v205_v25 }
 0x15d   : > { %v207_v32 = vcombine.low %v198_v29, %v202_v30  ;;  %v221_v34 = vrot.slane %v206_v31, %v213_v28 }
 0x15f   : > { %v214_v33 = vrot.slane %v207_v32, %v213_v28 }
 0x161   : > { %v222_v35 = vcombine.low %v214_v33, %v221_v34 }
 0x163   : > { %v229_v36 = vrot.slane %v222_v35, %v213_v28 }
 0x165   : > { %231 = vperm.xlu0 %437, %v229_v36  }
 0x1e4   : > { %v232_v37 = vpop.permute.xlu0 %231 }
 0x1e5   : > { %v236_v38 = vrot.slane %v232_v37, %v175_v11 }
 0x1e7   : > { %v243_v39 = vrot.slane %v236_v38, %v213_v28 }
 0x1e9   : > { %v250_v41 = vrot.slane %v243_v39, %v213_v28 }
 0x1eb   : > { %v252_v42 = vadd.f32 %v250_v41, %v157_v40 }
 0x1ed   : > { %254 = vst.msk [vmem:[#allocation2] sm:$0x1] %vm152_vm0, %v252_v42 }
 0x1f4   : > { %v258_v43 = vld [vmem:[#allocation2] sm:$0x1] }
 0x1f5   : > { %v259_v44 = vmul.f32 0.00390625, %v258_v43 }
 0x1f7   : > { %271 = vrot.lane.b32.xlu1 %v259_v44, %s528_s16 }
 0x1fb   : > { %261 = vrot.lane.b32.xlu1 %v259_v44, %s529_s23 }
 0x1ff   : > { %266 = vrot.lane.b32.xlu1 %v259_v44, %s530_s24 }
 0x269   : > { %v272_v45 = vpop.permute.xlu1 %271 }
 0x26a   : > { %v274_v46 = vsub.f32 %v259_v44, %v272_v45 }
 0x26c   : > { %v275_v47 = vmul.f32 %v274_v46, %v274_v46 }
 0x26d   : > { %v262_v49 = vpop.permute.xlu1 %261 }
 0x26e   : > { %v279_v48 = vmul.f32 %v275_v47, %v275_v47  ;;  %v264_v52 = vsub.f32 %v259_v44, %v262_v49 }
 0x270   : > { %281 = vrot.lane.b32.xlu1 %v279_v48, %s530_s24  ;;  %v265_v54 = vmul.f32 %v264_v52, %v264_v52 }
 0x271   : > { %v267_v50 = vpop.permute.xlu1 %266 }
 0x272   : > { %v269_v51 = vsub.f32 %v259_v44, %v267_v50  ;;  %v276_v56 = vmul.f32 %v265_v54, %v265_v54 }
 0x274   : > { %v270_v53 = vmul.f32 %v269_v51, %v269_v51 }
 0x276   : > { %v277_v55 = vmul.f32 %v270_v53, %v270_v53 }
 0x278   : > { %v278_v57 = vadd.f32 %v277_v55, %v276_v56 }
 0x2e2   : > { %v282_v58 = vpop.permute.xlu1 %281 }
 0x2e3   : > { %v284_v59 = vadd.f32 %v282_v58, %v278_v57 }
 0x2e5   : > { %438 = vrsqrt.f32 %v284_v59  ;;  %vm287_vm6 = vcmp.eq.f32.partialorder %v284_v59, inf  ;;  %v290_v62 = vand.u32 2147483648, %v284_v59  ;;  %vm289_vm7 = vcmp.eq.f32.partialorder %v284_v59, 0.0 }
 0x2ef   : > { %v439_v60 = vpop.eup %438 }
 0x2f0   : > { %v286_v61 = vmul.f32 %v439_v60, %v284_v59 }
 0x2f2   : > { %v288_v63 = vsel %vm287_vm6, %v284_v59, %v286_v61 }
 0x2f3   : > { %v291_v0 = vsel %vm289_vm7, %v290_v62, %v288_v63 }
 0x2f4   : > { %293 = vst.msk [vmem:[%s147_s27] sm:$0x1] %vm292_vm5, %v291_v0 }
 0x2f5 PF: > { %s14_s11 = sadd.s32 1, %s520_s11   ;;  %s665_s6 = smov %s504_s7 }
 0x2f6   : > { %p11_p9 = scmp.ge.s32.totalorder %s14_s11, 4   ;;  %s666_s7 = smov %s508_s8 }
 0x2f7   : > { %s667_s8 = smov %s586_s17  ;;  %s668_s9 = smov %s516_s10 }
 0x2f8   : > { %s669_s10 = smov %s671_s13  ;;  %13 = sbr.rel (!%p11_p9) target bundleno = 4 (0x4), region = 72 }
 0x2ff   :  { %311 = vsyncpa [#allocation4], 1 }
 0x300   :  { %313 = vsyncpa [#allocation4 + $0x1], 1 }

</bundles_post_ra>
